<compile_context>
chip_gen: v6e
topology: v6e:2x2x1
jax: 0.10.0
libtpu: 0.0.40
codegen_flags: <defaults>
</compile_context>

<pallas_src>
import functools

import jax
import jax.numpy as jnp
from jax.experimental import pallas as pl
from jax.experimental.pallas import tpu as pltpu


def _round_up(x, m):
    return (x + m - 1) // m * m


def _pool_kernel(batch_ref, x_ref, out_ref, *, b_pad):
    """Pool-first segment-sum of node features into per-graph rows.

    batch_ref: [1, tile_n] int32 graph ids (-1 for padded nodes)
    x_ref:     [tile_n, D_pad] bf16 concatenated node features (zero-padded)
    out_ref:   [B_pad, D_pad] f32 partial per-graph feature sums (one per split)
    """
    n = pl.program_id(1)
    tile_n = x_ref.shape[0]

    # Rebuild the pooling one-hot for this node tile in-register (no HBM onehot).
    # Padded nodes carry batch id -1 and therefore match no graph row.
    ids = batch_ref[...]                                               # [1, tile_n]
    graph_iota = jax.lax.broadcasted_iota(jnp.int32, (b_pad, tile_n), 0)
    onehot = (graph_iota == ids).astype(jnp.bfloat16)                  # [B_pad, tile_n]

    # Segment sum for this tile: [B_pad, tile_n] @ [tile_n, D_pad] on the MXU.
    contrib = jnp.dot(onehot, x_ref[...], preferred_element_type=jnp.float32)

    @pl.when(n == 0)
    def _():
        out_ref[...] = contrib

    @pl.when(n > 0)
    def _():
        out_ref[...] += contrib


def bce_forward(outs, batch, weights, biases, num_graphs, *,
                tile_n=2048, num_splits=2):
    """outs: list of [N, F_i] node features (backbone outputs).
    batch: [N] int graph assignment. weights[i]: [C, F_i] (torch Linear layout),
    biases[i]: [C]. Returns logits [num_graphs, C] (eval semantics)."""
    N = outs[0].shape[0]
    C = weights[0].shape[0]
    L1 = len(outs)
    assert len(weights) == L1 and len(biases) == L1
    D = sum(int(o.shape[1]) for o in outs)

    D_pad = _round_up(D, 128)                    # lane-dense feature dim
    B_pad = _round_up(max(num_graphs, 1), 8)     # sublane-aligned graph rows

    tile_n = min(tile_n, _round_up(N, 128))      # multiple of 128 (lane dim of ids)
    n_tiles = -(-N // tile_n)
    num_splits = max(1, min(num_splits, n_tiles))     # v7x: 2 TCs; collapses to 1
    tiles_per_split = -(-n_tiles // num_splits)
    N_pad = num_splits * tiles_per_split * tile_n

    # Glue: single concatenated bf16 feature slab (lane-dense, zero-padded rows/cols).
    x_cat = jnp.concatenate([o.astype(jnp.bfloat16) for o in outs], axis=1)   # [N, D]
    x_cat = jnp.pad(x_cat, ((0, N_pad - N), (0, D_pad - D)))                   # [N_pad, D_pad]

    # Node -> graph ids; padded nodes get id -1 so they never inflate a segment.
    batch = batch.astype(jnp.int32)
    batch_ids = jnp.pad(batch, (0, N_pad - N), constant_values=-1)[None, :]    # [1, N_pad]

    grid = (num_splits, tiles_per_split)

    flops = 2 * B_pad * N_pad * D_pad
    bytes_accessed = (2 * N_pad * D_pad                 # bf16 node features
                      + 4 * N_pad                       # int32 batch ids
                      + 4 * num_splits * B_pad * D_pad)  # f32 partial outputs
    cost = pl.CostEstimate(flops=flops, transcendentals=0,
                           bytes_accessed=bytes_accessed)

    kernel = functools.partial(_pool_kernel, b_pad=B_pad)

    parts = pl.pallas_call(
        kernel,
        out_shape=jax.ShapeDtypeStruct((num_splits, B_pad, D_pad), jnp.float32),
        grid=grid,
        in_specs=[
            pl.BlockSpec((1, tile_n),
                         lambda p, n: (0, p * tiles_per_split + n)),   # batch ids
            pl.BlockSpec((tile_n, D_pad),
                         lambda p, n: (p * tiles_per_split + n, 0)),   # X_cat tile
        ],
        out_specs=pl.BlockSpec((None, B_pad, D_pad), lambda p, n: (p, 0, 0)),
        compiler_params=pltpu.CompilerParams(
            dimension_semantics=("parallel", "arbitrary"),   # split TCs / reduce N
            vmem_limit_bytes=64 * 1024 * 1024),
        cost_estimate=cost,
    )(batch_ids, x_cat)

    # Tiny finalize outside the kernel: sum core-partials, mean-normalize, project.
    pooled = parts.sum(axis=0)[:num_graphs, :D]                         # [B, D]
    counts = jnp.zeros((num_graphs,), jnp.float32).at[batch].add(1.0)
    inv_cnt = (1.0 / jnp.maximum(counts, 1.0))[:, None]                 # [B, 1]
    pooled = pooled * inv_cnt

    w_cat = jnp.concatenate([w.T.astype(jnp.float32) for w in weights], axis=0)  # [D, C]
    b_sum = sum(b.astype(jnp.float32) for b in biases)                           # [C]
    return pooled @ w_cat + b_sum                                       # [B, C]


def bce_forward_ref(outs, batch, weights, biases, num_graphs):
    """Pure-JAX f32 reference mirroring the PyTorch forward (eval mode)."""
    onehot = (batch[None, :] == jnp.arange(num_graphs)[:, None]).astype(jnp.float32)
    counts = jnp.maximum(onehot.sum(axis=1, keepdims=True), 1.0)
    logits = 0.0
    for i, out_i in enumerate(outs):
        pool = (onehot @ out_i) / counts                                 # mean pool
        logits = logits + (pool @ weights[i].T + biases[i])
    return logits


if __name__ == "__main__":
    # Small deterministic config consistent with the module's __init__:
    #   net.d_in = 32, net.const = 32, net.num_layers = 2, num_classes = 2
    d_in, const, num_layers, num_classes = 32, 32, 2, 2
    N, B = 16, 2  # 16 nodes, 2 graphs

    feat_dims = [d_in] + [const] * num_layers
    L1 = len(feat_dims)

    key = jax.random.PRNGKey(0)
    keys = jax.random.split(key, 3 * L1)

    # Synthetic backbone outputs: out[0]: [N, d_in], out[1..L]: [N, const]
    outs = [jax.random.normal(keys[i], (N, feat_dims[i]), dtype=jnp.float32)
            for i in range(L1)]

    # Deterministic init for the Linear heads (torch layout: W [C, in], b [C]).
    weights, biases = [], []
    for i, f in enumerate(feat_dims):
        bound = 1.0 / (float(f) ** 0.5)
        w = jax.random.uniform(keys[L1 + i], (num_classes, f),
                               minval=-bound, maxval=bound, dtype=jnp.float32)
        b = jax.random.uniform(keys[2 * L1 + i], (num_classes,),
                               minval=-bound, maxval=bound, dtype=jnp.float32)
        weights.append(w)
        biases.append(b)

    # Graph assignment: first half of nodes -> graph 0, second half -> graph 1.
    batch = jnp.concatenate([jnp.zeros(N // 2, jnp.int32),
                             jnp.ones(N - N // 2, jnp.int32)])

    logits = bce_forward(outs, batch, weights, biases, B)
    logits = jax.block_until_ready(logits)

    ref = bce_forward_ref(outs, batch, weights, biases, B)
    assert logits.shape == (B, num_classes)
    assert jnp.allclose(logits, ref, atol=2e-2, rtol=2e-2), (logits, ref)

    print("KERNEL_OK")
</pallas_src>

<mosaic_0001>
module attributes {stable_mosaic.version = 11 : i64} {
  func.func @_pool_kernel(%arg0: i32, %arg1: i32, %arg2: memref<1x128xi32, #tpu.memory_space<vmem>>, %arg3: memref<128x128xbf16, #tpu.memory_space<vmem>>, %arg4: memref<1x8x128xf32, #tpu.memory_space<vmem>>) attributes {dimension_semantics = [#tpu.dimension_semantics<parallel>, #tpu.dimension_semantics<arbitrary>], iteration_bounds = array<i64: 1, 1>, scalar_prefetch = 0 : i64, scratch_operands = 0 : i64, tpu.core_type = #tpu.core_type<tc>, window_params = [{transform_indices = @transform_0, window_bounds = array<i64: 1, 128>}, {transform_indices = @transform_1, window_bounds = array<i64: 128, 128>}, {transform_indices = @transform_2, window_bounds = array<i64: 1, 8, 128>}]} {
    %c0 = arith.constant 0 : index
    %c0_0 = arith.constant 0 : index
    %0 = vector.load %arg2[%c0, %c0_0] : memref<1x128xi32, #tpu.memory_space<vmem>>, vector<1x128xi32>
    %1 = tpu.iota {dimensions = array<i32: 0>} : vector<8x128xi32>
    %2 = vector.broadcast %0 : vector<1x128xi32> to vector<8x128xi32>
    %3 = arith.cmpi eq, %1, %2 : vector<8x128xi32>
    %4 = arith.extui %3 : vector<8x128xi1> to vector<8x128xi32>
    %5 = arith.sitofp %4 : vector<8x128xi32> to vector<8x128xf32>
    %6 = arith.truncf %5 : vector<8x128xf32> to vector<8x128xbf16>
    %c0_1 = arith.constant 0 : index
    %c0_2 = arith.constant 0 : index
    %7 = vector.load %arg3[%c0_1, %c0_2] : memref<128x128xbf16, #tpu.memory_space<vmem>>, vector<128x128xbf16>
    %cst = arith.constant dense<0.000000e+00> : vector<8x128xf32>
    %8 = tpu.matmul %6, %7, %cst {dimension_numbers = #tpu.dot_dimension_numbers<[1], [0], [0], [1], [0, 0, 1, 1], [], []>} : vector<8x128xbf16>, vector<128x128xbf16>, vector<8x128xf32> -> vector<8x128xf32>
    %c0_i32 = arith.constant 0 : i32
    %9 = arith.cmpi eq, %arg1, %c0_i32 : i32
    %10 = arith.extui %9 : i1 to i32
    %c0_i32_3 = arith.constant 0 : i32
    %11 = arith.cmpi ne, %10, %c0_i32_3 : i32
    scf.if %11 {
      %c0_6 = arith.constant 0 : index
      %c0_7 = arith.constant 0 : index
      %c0_8 = arith.constant 0 : index
      %15 = vector.load %arg4[%c0_6, %c0_7, %c0_8] : memref<1x8x128xf32, #tpu.memory_space<vmem>>, vector<1x8x128xf32>
      %16 = vector.shape_cast %15 : vector<1x8x128xf32> to vector<8x128xf32>
      %17 = vector.shape_cast %8 : vector<8x128xf32> to vector<1x8x128xf32>
      tpu.vector_store %arg4[%c0_6, %c0_7, %c0_8], %17 {strides = array<i32>} : memref<1x8x128xf32, #tpu.memory_space<vmem>>, vector<1x8x128xf32>,
    } else {
    }
    %c0_i32_4 = arith.constant 0 : i32
    %12 = arith.cmpi sgt, %arg1, %c0_i32_4 : i32
    %13 = arith.extui %12 : i1 to i32
    %c0_i32_5 = arith.constant 0 : i32
    %14 = arith.cmpi ne, %13, %c0_i32_5 : i32
    scf.if %14 {
      %c0_6 = arith.constant 0 : index
      %c0_7 = arith.constant 0 : index
      %c0_8 = arith.constant 0 : index
      %15 = vector.load %arg4[%c0_6, %c0_7, %c0_8] : memref<1x8x128xf32, #tpu.memory_space<vmem>>, vector<1x8x128xf32>
      %16 = vector.shape_cast %15 : vector<1x8x128xf32> to vector<8x128xf32>
      %17 = arith.addf %16, %8 : vector<8x128xf32>
      %c0_9 = arith.constant 0 : index
      %c0_10 = arith.constant 0 : index
      %c0_11 = arith.constant 0 : index
      %18 = vector.load %arg4[%c0_9, %c0_10, %c0_11] : memref<1x8x128xf32, #tpu.memory_space<vmem>>, vector<1x8x128xf32>
      %19 = vector.shape_cast %18 : vector<1x8x128xf32> to vector<8x128xf32>
      %20 = vector.shape_cast %17 : vector<8x128xf32> to vector<1x8x128xf32>
      tpu.vector_store %arg4[%c0_9, %c0_10, %c0_11], %20 {strides = array<i32>} : memref<1x8x128xf32, #tpu.memory_space<vmem>>, vector<1x8x128xf32>,
    } else {
    }
    return
  }
  func.func @transform_0(%arg0: i32, %arg1: i32) -> (i32, i32) {
    %c1_i32 = arith.constant 1 : i32
    %0 = arith.muli %arg0, %c1_i32 : i32
    %1 = arith.addi %0, %arg1 : i32
    %c0_i32 = arith.constant 0 : i32
    %c0_i32_0 = arith.constant 0 : i32
    return %c0_i32, %1 : i32, i32
  }
  func.func @transform_1(%arg0: i32, %arg1: i32) -> (i32, i32) {
    %c1_i32 = arith.constant 1 : i32
    %0 = arith.muli %arg0, %c1_i32 : i32
    %1 = arith.addi %0, %arg1 : i32
    %c0_i32 = arith.constant 0 : i32
    %c0_i32_0 = arith.constant 0 : i32
    return %1, %c0_i32 : i32, i32
  }
  func.func @transform_2(%arg0: i32, %arg1: i32) -> (i32, i32, i32) {
    %c0_i32 = arith.constant 0 : i32
    %c0_i32_0 = arith.constant 0 : i32
    %c0_i32_1 = arith.constant 0 : i32
    return %arg0, %c0_i32, %c0_i32_0 : i32, i32, i32
  }
}

</mosaic_0001>

<bundles_post_ra>
// kernel: tpu_custom_call.1
= control target key start
LH: loop header
LB: loop body
LE: loop exit
PB: predicated region body
PF: predicated region fallthrough
CT: control target
= control target key end

     0   :  { %7 = vsyncpa [#allocation3], 0  ;;  %s347_s0 = inlined_call_operand.hbm [shape: s32[1,128], index: 0, kind: input, shape index: {}]   ;;  %s348_s1 = inlined_call_operand.hbm [shape: bf16[128,128], index: 1, kind: input, shape index: {}]   ;;  %s349_s2 = inlined_call_operand.hbm [shape: f32[1,8,128], index: 2, kind: output, shape index: {}]  }
   0x1   :  { %8 = vsyncpa [#allocation6], 0 }
   0x2   :  { %9 = vsyncpa [#allocation4], 0  ;;  %s315_s9 = smov [#allocation2]   ;;  %s316_s11 = smov [#allocation5]  }
   0x3   :  { %s19_s10 = sshll.u32 %s315_s9, 4  ;;  %s32_s12 = sshll.u32 %s316_s11, 4  ;;  %s20_s10 = int_to_ptr.vmem [resolvable:$true] %s19_s10  ;;  %s33_s12 = int_to_ptr.vmem [resolvable:$true] %s32_s12 }
   0x4   :  { %s257_s13 = scalar_lea.vmem %s20_s10, 16  ;;  %s261_s14 = scalar_lea.vmem %s20_s10, 32 }
   0x5   :  { %p258_p0 = scmp.ne.s32.totalorder %s20_s10, %s257_s13  ;;  %p262_p1 = scmp.lt.s32.totalorder %s20_s10, %s20_s10 }
   0x6   :  { %p263_p2 = scmp.lt.s32.totalorder %s261_s14, %s257_s13 }
   0x8   :  { %p264_p3 = por %p263_p2, %p262_p1 }
   0xa   :  { %p265_p4 = pnand %p264_p3, %p258_p0 }
   0xc   :  { %268 = shalt.err (!%p265_p4)
}
   0xd   :  { %22 = dma.hbm_to_vmem [thread:$0]  %s347_s0, 16, %s20_s10, [#allocation3]  }
   0xe   :  { %s277_s17 = scalar_lea.vmem %s33_s12, 1024  ;;  %p282_p6 = scmp.lt.s32.totalorder %s33_s12, %s33_s12 }
   0xf   :  { %p278_p5 = scmp.ne.s32.totalorder %s33_s12, %s277_s17  ;;  %p283_p7 = scmp.lt.s32.totalorder %s277_s17, %s277_s17 }
  0x11   :  { %p284_p8 = por %p283_p7, %p282_p6 }
  0x13   :  { %p285_p9 = pnand %p284_p8, %p278_p5 }
  0x15   :  { %288 = shalt.err (!%p285_p9)
}
  0x16   :  { %s317_s18 = smov 64   ;;  %s318_s19 = smov 4  }
  0x17   :  { %38 = dma.hbm_to_vmem [thread:$0]  %s348_s1, 1024, %s33_s12, [#allocation6], %s317_s18, %s317_s18, %s318_s19  }
  0x18   :  { %309 = dma.done.wait [#allocation3], 16  }
  0x19   :  { %310 = vsyncadd [#allocation3], 4294967280 }
  0x1a   :  { %311 = dma.done.wait [#allocation6], 1024  }
  0x1b   :  { %312 = vsyncadd [#allocation6], 4294966272  ;;  %v319_v0 = vmov 0.0   ;;  %vm320_vm0 = vmmov 0   ;;  %v241_v1 = vld [vmem:[#allocation5 + $0x38] sm:$0xff]   ;;  %v242_v2 = vld [vmem:[#allocation5 + $0x30] sm:$0xff]   ;;  %v50_v7 = vlaneseq }
  0x1c   :  { %213 = vmatprep.subr.bf16.mxu0 %v319_v0  ;;  %229 = vmatprep.mubr.msk.bf16.mxu0 %vm320_vm0, %v319_v0  ;;  %v243_v3 = vld [vmem:[#allocation5 + $0x28] sm:$0xff]   ;;  %v244_v4 = vld [vmem:[#allocation5 + $0x20] sm:$0xff]   ;;  %v245_v5 = vld [vmem:[#allocation5 + $0x18] sm:$0xff]   ;;  %v321_v12 = vmov 1.0|1.0   ;;  %s322_s0 = smov [#allocation7]  }
  0x1d   :  { %214 = vmatpush3.bf16.msra.mxu0 %v241_v1  ;;  %v246_v6 = vld [vmem:[#allocation5 + $0x10] sm:$0xff]   ;;  %v247_v8 = vld [vmem:[#allocation5 + $0x8] sm:$0xff]   ;;  %v51_v9 = vshrl.u32 %v50_v7, 7  ;;  %v192_v10 = vld [vmem:[#allocation2] ss:$0 sm:$0xff]  ;;  %s182_s1 = sshll.u32 %s322_s0, 4  ;;  %s183_s1 = int_to_ptr.vmem [resolvable:$true] %s182_s1 }
  0x1e   :  { %215 = vmatprep.subr.bf16.mxu0 %v319_v0  ;;  %v248_v11 = vld [vmem:[#allocation5] sm:$0xff]   ;;  %s289_s22 = scalar_lea.vmem %s183_s1, 128  ;;  %p294_p11 = scmp.lt.s32.totalorder %s183_s1, %s183_s1 }
  0x1f   :  { %vm56_vm1 = vcmp.eq.s32.totalorder %v51_v9, %v192_v10  ;;  %p290_p10 = scmp.ne.s32.totalorder %s183_s1, %s289_s22  ;;  %p295_p12 = scmp.lt.s32.totalorder %s289_s22, %s289_s22 }
  0x20   :  { %vm202_vm2 = vmpackc.low %vm56_vm1, %vm56_vm1 }
  0x21   :  { %216 = vmatpush3.bf16.msra.mxu0 %v242_v2  ;;  %p296_p13 = por %p295_p12, %p294_p11 }
  0x22   :  { %217 = vmatprep.subr.bf16.mxu0 %v319_v0 }
  0x23   :  { %p297_p0 = pnand %p296_p13, %p290_p10 }
  0x25   :  { %218 = vmatpush3.bf16.msra.mxu0 %v243_v3 }
  0x26   :  { %219 = vmatprep.subr.bf16.mxu0 %v319_v0 }
  0x29   :  { %220 = vmatpush3.bf16.msra.mxu0 %v244_v4 }
  0x2a   :  { %221 = vmatprep.subr.bf16.mxu0 %v319_v0 }
  0x2d   :  { %222 = vmatpush3.bf16.msra.mxu0 %v245_v5 }
  0x2e   :  { %223 = vmatprep.subr.bf16.mxu0 %v319_v0 }
  0x31   :  { %224 = vmatpush3.bf16.msra.mxu0 %v246_v6 }
  0x32   :  { %225 = vmatprep.subr.bf16.mxu0 %v319_v0 }
  0x35   :  { %226 = vmatpush3.bf16.msra.mxu0 %v247_v8 }
  0x36   :  { %227 = vmatprep.subr.bf16.mxu0 %v319_v0 }
  0x39   :  { %228 = vmatpush3.bf16.msra.mxu0 %v248_v11 }
  0x3c   :  { %230 = vmatmul.mubr.msk.bf16.vlgmr.msra.gmra.mxu0 %vm202_vm2, %v321_v12 }
  0xfc   :  { %v158_v13 = vpop.f32.mrf.mxu0 }
  0xfd   :  { %168 = vst [vmem:[#allocation7] sm:$0xff] %v158_v13 }
  0xfe   :  { %v231_v14 = vpop.f32.mrf.mxu0 }
  0xff   :  { %300 = shalt.err (!%p297_p0)
}
 0x100   :  { %185 = dma.vmem_to_hbm [thread:$0]  %s183_s1, 128, %s349_s2, [#allocation4]   ;;  %v161_v15 = vpop.f32.mrf.mxu0 }
 0x102   :  { %v232_v16 = vpop.f32.mrf.mxu0 }
 0x103   :  { %313 = dma.done.wait [#allocation4], 128  }
 0x104   :  { %314 = vsyncadd [#allocation4], 4294967168 }
 0x105   :  { %189 = vsyncpa [#allocation3], 1 }
 0x106   :  { %190 = vsyncpa [#allocation6], 1 }
 0x107   :  { %191 = vsyncpa [#allocation4], 1 }

</bundles_post_ra>
